<compile_context>
chip_gen: v7x
topology: tpu7x:2x2x1
jax: 0.10.0
libtpu: 0.0.40
codegen_flags: <defaults>
</compile_context>

<pallas_src>
import functools

import jax
import jax.numpy as jnp
from jax import lax
from jax.experimental import pallas as pl
from jax.experimental.pallas import tpu as pltpu

BN_EPS = 1e-5


# ----------------------------- kernels -------------------------------------


def _stats_kernel(x_ref, wt_ref, b_ref, sum_ref, sq_ref, *, bt):
    """conv1x1 + bias + ReLU on this tile; emit per-channel partial sum and
    sum-of-squares for this grid step (combined later in plain JAX)."""
    s = jnp.zeros(sum_ref.shape, jnp.float32)
    q = jnp.zeros(sq_ref.shape, jnp.float32)
    for bi in range(bt):  # bt <= 4, unrolled
        # wt: [Cout, Cin], x slab: [Cin, TS] -> f32 accumulate on the MXU.
        y = jnp.dot(wt_ref[...], x_ref[bi],
                    preferred_element_type=jnp.float32)
        y = jnp.maximum(y + b_ref[...], 0.0)                  # [Cout, TS] f32
        # Lane reductions on the VPU/XLU -- NOT a ones-matmul (a [TS,1] f32
        # operand is lane-sparse/huge and f32 matmuls are emulated).
        s = s + jnp.sum(y, axis=1, keepdims=True)
        q = q + jnp.sum(y * y, axis=1, keepdims=True)
    sum_ref[...] = s
    sq_ref[...] = q


def _norm_kernel(x_ref, wt_ref, p_ref, o_ref, *, bt):
    """Recompute conv1x1 + bias + ReLU (Cin tiny -> recompute beats an f32 HBM
    round trip of y) and apply the folded BN affine; write lane-dense output."""
    bias = p_ref[0]     # [Cout, 1]
    scale = p_ref[1]
    shift = p_ref[2]
    for bi in range(bt):
        y = jnp.dot(wt_ref[...], x_ref[bi],
                    preferred_element_type=jnp.float32)
        y = jnp.maximum(y + bias, 0.0)
        o_ref[bi] = (y * scale + shift).astype(o_ref.dtype)


# --------------------------- tiling helpers ---------------------------------


def _vmem_limit_bytes():
    """Per-generation scoped-VMEM request (v7x has only 64 MiB per TC)."""
    try:
        cap = int(pltpu.get_tpu_info().vmem_capacity_bytes)
    except Exception:
        cap = 64 << 20  # conservative: assume the smallest per-core VMEM (v7x)
    return min(cap // 2, 32 << 20)


def _pad_to(v, m):
    return ((v + m - 1) // m) * m


def _choose_images_per_step(n, cin, x_itemsize):
    """Process several images per grid step when Cin underfills the sublane
    tile (8 rows f32 / 16 rows bf16) to amortize per-step overhead. Cap at 4."""
    sub = 16 if x_itemsize <= 2 else 8
    target = min(n, 4, max(1, sub // max(cin, 1)))
    for cand in range(target, 0, -1):
        if n % cand == 0:
            return cand
    return 1


def _choose_spatial_tile(hw, cin, cout, bt, x_itemsize, out_itemsize,
                         budget_bytes):
    """Largest multiple-of-128 spatial tile dividing HW whose real VMEM
    footprint (sublane-padded x, output tile, f32 y / y*y temporaries, all
    double-buffered where applicable) fits the budget."""
    if hw % 128 != 0:
        # Irregular spatial extent: full row (block dim == array dim).
        return hw
    x_sub = 16 if x_itemsize <= 2 else 8
    o_sub = 16 if out_itemsize <= 2 else 8
    cin_p = _pad_to(cin, x_sub)
    cout_o = _pad_to(cout, o_sub)
    cout_f = _pad_to(cout, 8)
    per_px = (2 * bt * cin_p * x_itemsize       # double-buffered x tile
              + 2 * bt * cout_o * out_itemsize  # double-buffered out tile
              + 2 * bt * cout_f * 4)            # f32 y and y*y temporaries
    ts = (budget_bytes // per_px) // 128 * 128
    ts = max(128, min(hw, ts))
    while hw % ts != 0:
        ts -= 128
    return ts


# ------------------------------ forward -------------------------------------


def bottleconv_forward(x_nchw, w_oc_ic, b, gamma, beta, *,
                       stream_dtype=jnp.bfloat16, out_dtype=jnp.bfloat16):
    """x_nchw: [N, Cin, H, W]; w_oc_ic: [Cout, Cin] (PyTorch 1x1-conv layout);
    b/gamma/beta: [Cout].  Returns [N, Cout, H, W] in out_dtype.

    Defaults (bf16 streaming + bf16 output) minimize HBM traffic; pass
    stream_dtype=out_dtype=jnp.float32 for PyTorch-f32-comparable numerics."""
    n, cin, h, wdt = x_nchw.shape
    cout = w_oc_ic.shape[0]
    hw = h * wdt
    x_item = jnp.dtype(stream_dtype).itemsize
    out_item = jnp.dtype(out_dtype).itemsize

    # Zero-copy reshape of NCHW: channels on sublanes, spatial on lanes
    # (lane-dense output, no transpose materialized).
    x3d = x_nchw.reshape(n, cin, hw).astype(stream_dtype)
    wt = w_oc_ic.astype(stream_dtype)                      # [Cout, Cin]
    b2 = b.reshape(cout, 1).astype(jnp.float32)

    bt = _choose_images_per_step(n, cin, x_item)
    vmem_limit = _vmem_limit_bytes()
    ts = _choose_spatial_tile(hw, cin, cout, bt, x_item, out_item,
                              budget_bytes=int(vmem_limit * 0.6))
    g_img, g_sp = n // bt, hw // ts
    m_tile = float(bt * ts)
    m_total = float(n * hw)

    cparams = pltpu.CompilerParams(
        dimension_semantics=("parallel", "parallel"),
        vmem_limit_bytes=int(vmem_limit),
    )

    # ---------------- pass 1: per-tile partial statistics -------------------
    stats_cost = pl.CostEstimate(
        flops=int(2 * m_total * cin * cout + 4 * m_total * cout),
        transcendentals=0,
        bytes_accessed=int(m_total * cin * x_item + cout * cin * x_item
                           + cout * 4 + 2 * g_img * g_sp * cout * 4),
    )
    psum, psq = pl.pallas_call(
        functools.partial(_stats_kernel, bt=bt),
        out_shape=(
            jax.ShapeDtypeStruct((g_img, g_sp, cout, 1), jnp.float32),
            jax.ShapeDtypeStruct((g_img, g_sp, cout, 1), jnp.float32),
        ),
        grid_spec=pltpu.PrefetchScalarGridSpec(
            num_scalar_prefetch=0,
            grid=(g_img, g_sp),
            in_specs=[
                pl.BlockSpec((bt, cin, ts), lambda i, s: (i, 0, s)),
                pl.BlockSpec((cout, cin), lambda i, s: (0, 0)),
                pl.BlockSpec((cout, 1), lambda i, s: (0, 0)),
            ],
            out_specs=[
                pl.BlockSpec((None, None, cout, 1), lambda i, s: (i, s, 0, 0)),
                pl.BlockSpec((None, None, cout, 1), lambda i, s: (i, s, 0, 0)),
            ],
        ),
        compiler_params=cparams,
        cost_estimate=stats_cost,
    )(x3d, wt, b2)

    # --------- combine partials (Chan parallel variance) in plain JAX -------
    ps = psum.reshape(-1, cout)                 # [T, Cout]
    pq = psq.reshape(-1, cout)
    mean_t = ps / m_tile
    m2_t = pq - ps * mean_t                     # per-tile sum of squared devs
    mean = jnp.sum(ps, axis=0) / m_total
    m2 = jnp.sum(m2_t, axis=0) + m_tile * jnp.sum((mean_t - mean[None, :]) ** 2,
                                                  axis=0)
    var = jnp.maximum(m2 / m_total, 0.0)        # biased var (BN normalization)
    scale = gamma.astype(jnp.float32) * lax.rsqrt(var + BN_EPS)
    shift = beta.astype(jnp.float32) - mean * scale
    params = jnp.stack(
        [b.astype(jnp.float32), scale, shift], axis=0).reshape(3, cout, 1)

    # ---------------- pass 2: normalize and write output --------------------
    norm_cost = pl.CostEstimate(
        flops=int(2 * m_total * cin * cout + 4 * m_total * cout),
        transcendentals=0,
        bytes_accessed=int(m_total * cin * x_item + m_total * cout * out_item
                           + cout * cin * x_item + 3 * cout * 4),
    )
    out3d = pl.pallas_call(
        functools.partial(_norm_kernel, bt=bt),
        out_shape=jax.ShapeDtypeStruct((n, cout, hw), out_dtype),
        grid_spec=pltpu.PrefetchScalarGridSpec(
            num_scalar_prefetch=0,
            grid=(g_img, g_sp),
            in_specs=[
                pl.BlockSpec((bt, cin, ts), lambda i, s: (i, 0, s)),
                pl.BlockSpec((cout, cin), lambda i, s: (0, 0)),
                pl.BlockSpec((3, cout, 1), lambda i, s: (0, 0, 0)),
            ],
            out_specs=pl.BlockSpec((bt, cout, ts), lambda i, s: (i, 0, s)),
        ),
        compiler_params=cparams,
        cost_estimate=norm_cost,
    )(x3d, wt, params)

    return out3d.reshape(n, cout, h, wdt)


# ------------------------------ reference -----------------------------------


def reference_forward(x_nchw, w_oc_ic, b, gamma, beta, conv_dtype=jnp.float32):
    """Pure-JAX reference: conv1x1 -> ReLU -> BatchNorm2d (training mode).
    conv_dtype emulates the kernel's input-streaming precision."""
    x = x_nchw.astype(conv_dtype).astype(jnp.float32)
    w = w_oc_ic.astype(conv_dtype).astype(jnp.float32)
    y = jnp.einsum("nihw,oi->nohw", x, w) + b[None, :, None, None]
    y = jnp.maximum(y, 0.0)
    mean = jnp.mean(y, axis=(0, 2, 3), keepdims=True)
    var = jnp.mean((y - mean) ** 2, axis=(0, 2, 3), keepdims=True)
    return (gamma[None, :, None, None] * (y - mean) / jnp.sqrt(var + BN_EPS)
            + beta[None, :, None, None])


if __name__ == "__main__":
    # Small shapes consistent with the module: N=2, Cin=4, Cout=8, H=W=16.
    N, CIN, COUT, H, W = 2, 4, 8, 16, 16

    key = jax.random.PRNGKey(0)
    kx, kw, kb = jax.random.split(key, 3)

    x = jax.random.normal(kx, (N, CIN, H, W), dtype=jnp.float32)
    # conv1x1 weight in PyTorch layout [Cout, Cin] (kernel size 1), bias [Cout].
    w = jax.random.normal(kw, (COUT, CIN), dtype=jnp.float32) * 0.1
    b = jax.random.normal(kb, (COUT,), dtype=jnp.float32) * 0.1
    # BatchNorm2d learnable params at PyTorch defaults.
    gamma = jnp.ones((COUT,), dtype=jnp.float32)
    beta = jnp.zeros((COUT,), dtype=jnp.float32)

    # Default path: bf16 streaming + bf16 output (bandwidth-optimal).
    out = jax.block_until_ready(bottleconv_forward(x, w, b, gamma, beta))
    assert out.shape == (N, COUT, H, W)
    ref_bf16 = reference_forward(x, w, b, gamma, beta, conv_dtype=jnp.bfloat16)
    assert jnp.allclose(out.astype(jnp.float32), ref_bf16, atol=5e-2, rtol=5e-2), \
        "mismatch vs bf16-streamed reference"

    # Exact-f32 path matches PyTorch f32 numerics.
    out_f32 = jax.block_until_ready(
        bottleconv_forward(x, w, b, gamma, beta,
                           stream_dtype=jnp.float32, out_dtype=jnp.float32))
    ref_f32 = reference_forward(x, w, b, gamma, beta, conv_dtype=jnp.float32)
    assert jnp.allclose(out_f32, ref_f32, atol=1e-4, rtol=1e-4), \
        "mismatch vs f32 reference"

    print("KERNEL_OK")
</pallas_src>

<mosaic_0001>
module attributes {stable_mosaic.version = 11 : i64} {
  func.func @_stats_kernel(%arg0: i32, %arg1: i32, %arg2: memref<2x4x256xbf16, #tpu.memory_space<vmem>>, %arg3: memref<8x4xbf16, #tpu.memory_space<vmem>>, %arg4: memref<8x1xf32, #tpu.memory_space<vmem>>, %arg5: memref<1x1x8x1xf32, #tpu.memory_space<vmem>>, %arg6: memref<1x1x8x1xf32, #tpu.memory_space<vmem>>) attributes {dimension_semantics = [#tpu.dimension_semantics<parallel>, #tpu.dimension_semantics<parallel>], iteration_bounds = array<i64: 1, 1>, scalar_prefetch = 0 : i64, scratch_operands = 0 : i64, tpu.core_type = #tpu.core_type<tc>, window_params = [{transform_indices = @transform_0, window_bounds = array<i64: 2, 4, 256>}, {pipeline_mode = #tpu.pipeline_mode<synchronous>, transform_indices = @transform_1, window_bounds = array<i64: 8, 4>}, {pipeline_mode = #tpu.pipeline_mode<synchronous>, transform_indices = @transform_2, window_bounds = array<i64: 8, 1>}, {transform_indices = @transform_3, window_bounds = array<i64: 1, 1, 8, 1>}, {transform_indices = @transform_4, window_bounds = array<i64: 1, 1, 8, 1>}]} {
    %cst = arith.constant 0.000000e+00 : f32
    %0 = vector.broadcast %cst : f32 to vector<8x1xf32>
    %cst_0 = arith.constant 0.000000e+00 : f32
    %1 = vector.broadcast %cst_0 : f32 to vector<8x1xf32>
    %c0 = arith.constant 0 : index
    %c0_1 = arith.constant 0 : index
    %2 = vector.load %arg3[%c0, %c0_1] : memref<8x4xbf16, #tpu.memory_space<vmem>>, vector<8x4xbf16>
    %c0_2 = arith.constant 0 : index
    %c0_3 = arith.constant 0 : index
    %c0_4 = arith.constant 0 : index
    %3 = vector.load %arg2[%c0_2, %c0_3, %c0_4] : memref<2x4x256xbf16, #tpu.memory_space<vmem>>, vector<1x4x256xbf16>
    %4 = vector.shape_cast %3 : vector<1x4x256xbf16> to vector<4x256xbf16>
    %cst_5 = arith.constant dense<0.000000e+00> : vector<8x256xf32>
    %5 = tpu.matmul %2, %4, %cst_5 {dimension_numbers = #tpu.dot_dimension_numbers<[1], [0], [0], [1], [0, 0, 1, 1], [], []>} : vector<8x4xbf16>, vector<4x256xbf16>, vector<8x256xf32> -> vector<8x256xf32>
    %c0_6 = arith.constant 0 : index
    %c0_7 = arith.constant 0 : index
    %6 = vector.load %arg4[%c0_6, %c0_7] : memref<8x1xf32, #tpu.memory_space<vmem>>, vector<8x1xf32>
    %7 = vector.broadcast %6 : vector<8x1xf32> to vector<8x256xf32>
    %8 = arith.addf %5, %7 : vector<8x256xf32>
    %cst_8 = arith.constant 0.000000e+00 : f32
    %9 = vector.broadcast %cst_8 : f32 to vector<8x256xf32>
    %10 = arith.maximumf %8, %9 : vector<8x256xf32>
    %cst_9 = arith.constant dense<0.000000e+00> : vector<8xf32>
    %11 = vector.multi_reduction <add>, %10, %cst_9 [1] : vector<8x256xf32> to vector<8xf32>
    %12 = vector.shape_cast %11 : vector<8xf32> to vector<8x1xf32>
    %13 = arith.addf %0, %12 : vector<8x1xf32>
    %14 = arith.mulf %10, %10 : vector<8x256xf32>
    %cst_10 = arith.constant dense<0.000000e+00> : vector<8xf32>
    %15 = vector.multi_reduction <add>, %14, %cst_10 [1] : vector<8x256xf32> to vector<8xf32>
    %16 = vector.shape_cast %15 : vector<8xf32> to vector<8x1xf32>
    %17 = arith.addf %1, %16 : vector<8x1xf32>
    %c0_11 = arith.constant 0 : index
    %c0_12 = arith.constant 0 : index
    %18 = vector.load %arg3[%c0_11, %c0_12] : memref<8x4xbf16, #tpu.memory_space<vmem>>, vector<8x4xbf16>
    %c1 = arith.constant 1 : index
    %c0_13 = arith.constant 0 : index
    %c0_14 = arith.constant 0 : index
    %19 = vector.load %arg2[%c1, %c0_13, %c0_14] : memref<2x4x256xbf16, #tpu.memory_space<vmem>>, vector<1x4x256xbf16>
    %20 = vector.shape_cast %19 : vector<1x4x256xbf16> to vector<4x256xbf16>
    %cst_15 = arith.constant dense<0.000000e+00> : vector<8x256xf32>
    %21 = tpu.matmul %18, %20, %cst_15 {dimension_numbers = #tpu.dot_dimension_numbers<[1], [0], [0], [1], [0, 0, 1, 1], [], []>} : vector<8x4xbf16>, vector<4x256xbf16>, vector<8x256xf32> -> vector<8x256xf32>
    %c0_16 = arith.constant 0 : index
    %c0_17 = arith.constant 0 : index
    %22 = vector.load %arg4[%c0_16, %c0_17] : memref<8x1xf32, #tpu.memory_space<vmem>>, vector<8x1xf32>
    %23 = vector.broadcast %22 : vector<8x1xf32> to vector<8x256xf32>
    %24 = arith.addf %21, %23 : vector<8x256xf32>
    %cst_18 = arith.constant 0.000000e+00 : f32
    %25 = vector.broadcast %cst_18 : f32 to vector<8x256xf32>
    %26 = arith.maximumf %24, %25 : vector<8x256xf32>
    %cst_19 = arith.constant dense<0.000000e+00> : vector<8xf32>
    %27 = vector.multi_reduction <add>, %26, %cst_19 [1] : vector<8x256xf32> to vector<8xf32>
    %28 = vector.shape_cast %27 : vector<8xf32> to vector<8x1xf32>
    %29 = arith.addf %13, %28 : vector<8x1xf32>
    %30 = arith.mulf %26, %26 : vector<8x256xf32>
    %cst_20 = arith.constant dense<0.000000e+00> : vector<8xf32>
    %31 = vector.multi_reduction <add>, %30, %cst_20 [1] : vector<8x256xf32> to vector<8xf32>
    %32 = vector.shape_cast %31 : vector<8xf32> to vector<8x1xf32>
    %33 = arith.addf %17, %32 : vector<8x1xf32>
    %c0_21 = arith.constant 0 : index
    %c0_22 = arith.constant 0 : index
    %c0_23 = arith.constant 0 : index
    %c0_24 = arith.constant 0 : index
    %34 = vector.load %arg5[%c0_21, %c0_22, %c0_23, %c0_24] : memref<1x1x8x1xf32, #tpu.memory_space<vmem>>, vector<1x1x8x1xf32>
    %35 = vector.shape_cast %34 : vector<1x1x8x1xf32> to vector<8x1xf32>
    %36 = vector.shape_cast %29 : vector<8x1xf32> to vector<1x1x8x1xf32>
    tpu.vector_store %arg5[%c0_21, %c0_22, %c0_23, %c0_24], %36 {strides = array<i32>} : memref<1x1x8x1xf32, #tpu.memory_space<vmem>>, vector<1x1x8x1xf32>,
    %c0_25 = arith.constant 0 : index
    %c0_26 = arith.constant 0 : index
    %c0_27 = arith.constant 0 : index
    %c0_28 = arith.constant 0 : index
    %37 = vector.load %arg6[%c0_25, %c0_26, %c0_27, %c0_28] : memref<1x1x8x1xf32, #tpu.memory_space<vmem>>, vector<1x1x8x1xf32>
    %38 = vector.shape_cast %37 : vector<1x1x8x1xf32> to vector<8x1xf32>
    %39 = vector.shape_cast %33 : vector<8x1xf32> to vector<1x1x8x1xf32>
    tpu.vector_store %arg6[%c0_25, %c0_26, %c0_27, %c0_28], %39 {strides = array<i32>} : memref<1x1x8x1xf32, #tpu.memory_space<vmem>>, vector<1x1x8x1xf32>,
    return
  }
  func.func @transform_0(%arg0: i32, %arg1: i32) -> (i32, i32, i32) {
    %c0_i32 = arith.constant 0 : i32
    %c0_i32_0 = arith.constant 0 : i32
    return %arg0, %c0_i32, %arg1 : i32, i32, i32
  }
  func.func @transform_1(%arg0: i32, %arg1: i32) -> (i32, i32) {
    %c0_i32 = arith.constant 0 : i32
    %c0_i32_0 = arith.constant 0 : i32
    %c0_i32_1 = arith.constant 0 : i32
    return %c0_i32, %c0_i32_0 : i32, i32
  }
  func.func @transform_2(%arg0: i32, %arg1: i32) -> (i32, i32) {
    %c0_i32 = arith.constant 0 : i32
    %c0_i32_0 = arith.constant 0 : i32
    %c0_i32_1 = arith.constant 0 : i32
    return %c0_i32, %c0_i32_0 : i32, i32
  }
  func.func @transform_3(%arg0: i32, %arg1: i32) -> (i32, i32, i32, i32) {
    %c0_i32 = arith.constant 0 : i32
    %c0_i32_0 = arith.constant 0 : i32
    %c0_i32_1 = arith.constant 0 : i32
    return %arg0, %arg1, %c0_i32, %c0_i32_0 : i32, i32, i32, i32
  }
  func.func @transform_4(%arg0: i32, %arg1: i32) -> (i32, i32, i32, i32) {
    %c0_i32 = arith.constant 0 : i32
    %c0_i32_0 = arith.constant 0 : i32
    %c0_i32_1 = arith.constant 0 : i32
    return %arg0, %arg1, %c0_i32, %c0_i32_0 : i32, i32, i32, i32
  }
}

</mosaic_0001>

<bundles_post_ra>
// kernel: tpu_custom_call.1
= control target key start
LH: loop header
LB: loop body
LE: loop exit
PB: predicated region body
PF: predicated region fallthrough
CT: control target
= control target key end

     0   :  { %vm38_vm0 = vcmask 1041408   ;;  %v188_v1 = vmov 0   ;;  %vm34_vm1 = vcmask 31744   ;;  %vm168_vm2 = vcmask 7168   ;;  %s236_s0 = inlined_call_operand.vmem [shape: bf16[2,4,256], index: 0, kind: input, shape index: {}]   ;;  %s237_s2 = inlined_call_operand.vmem [shape: f32[8,1], index: 2, kind: input, shape index: {}]   ;;  %s238_s1 = inlined_call_operand.vmem [shape: bf16[8,4], index: 1, kind: input, shape index: {}]   ;;  %s239_s3 = inlined_call_operand.vmem [shape: f32[1,1,8,1], index: 3, kind: output, shape index: {0}]   ;;  %s240_s4 = inlined_call_operand.vmem [shape: f32[1,1,8,1], index: 4, kind: output, shape index: {1}]  }
   0x1   :  { %v179_v0 = vld.sshfl [vmem:[%s236_s0] sm:$0x33 pattern:$0x76325410]  ;;  %77 = vmatprep.mubr.bf16.mxu0 %v188_v1  ;;  %147 = vmatprep.mubr.bf16.mxu1 %v188_v1 }
   0x2   :  { %v33_v2 = vcombine.high %v179_v0, %v179_v0  ;;  %v183_v3 = vld.sshfl [vmem:[%s236_s0 + $0x4] sm:$0x33 pattern:$0x76325410]  ;;  %v40_v4 = vsel %vm38_vm0, %v179_v0, 0  ;;  %187 = vset.pattern.permute.xlu0 %v188_v1 }
   0x3   :  { %v19_v5 = vld [vmem:[%s237_s2] sm:$0xff]  ;;  %v108_v6 = vcombine.high %v183_v3, %v183_v3  ;;  %v110_v7 = vsel %vm38_vm0, %v183_v3, 0 }
   0x4   :  { %22 = vperm.xlu0 %187, %v19_v5   ;;  %180 = vmatprep.subr.msk.bf16.mxu0 %vm38_vm0, %v33_v2  ;;  %v17_v8 = vld [vmem:[%s238_s1] sm:$0xf] }
   0x5   :  { %184 = vmatprep.subr.msk.bf16.mxu1 %vm38_vm0, %v108_v6  ;;  %46 = vmatpush1.bf16.msra.mxu0 %v40_v4 }
   0x6   :  { %116 = vmatpush1.bf16.msra.mxu1 %v110_v7 }
   0x8   :  { %181 = vmatmul.mubr.msk.bf16.vlgmr.msra.gmra.mrb[0].mxu0 %vm34_vm1, %v17_v8 }
   0x9   :  { %185 = vmatmul.mubr.msk.bf16.vlgmr.msra.gmra.mrb[0].mxu1 %vm34_vm1, %v17_v8 }
  0x83   :  { %v23_v9 = vpop.permute.xlu0 %22 }
  0xdb   :  { %v79_v10 = vpop.f32.mrb[0].mxu0 }
  0xdc   :  { %v80_v11 = vadd.f32 %v79_v10, %v23_v9  ;;  %v149_v12 = vpop.f32.mrb[0].mxu1  ;;  %v81_v13 = vpop.f32.mrb[1].mxu0 }
  0xdd   :  { %v150_v14 = vadd.f32 %v149_v12, %v23_v9  ;;  %v82_v15 = vadd.f32 %v81_v13, %v23_v9  ;;  %v151_v16 = vpop.f32.mrb[1].mxu1  ;;  %v83_v17 = vpop.f32.mrb[2].mxu0 }
  0xde   :  { %v86_v18 = vmax.f32 %v80_v11, 0.0  ;;  %v152_v19 = vadd.f32 %v151_v16, %v23_v9  ;;  %v153_v20 = vpop.f32.mrb[2].mxu1  ;;  %v84_v21 = vpop.f32.mrb[3].mxu0 }
  0xdf   :  { %v156_v22 = vmax.f32 %v150_v14, 0.0  ;;  %v87_v23 = vmax.f32 %v82_v15, 0.0  ;;  %v154_v24 = vpop.f32.mrb[3].mxu1 }
  0xe0   :  { %v92_v25 = vmul.f32 %v86_v18, %v86_v18  ;;  %v157_v26 = vmax.f32 %v152_v19, 0.0 }
  0xe1   :  { %v162_v27 = vmul.f32 %v156_v22, %v156_v22  ;;  %v93_v28 = vmul.f32 %v87_v23, %v87_v23  ;;  %v88_v29 = vadd.f32 %v87_v23, %v86_v18 }
  0xe2   :  { %v163_v30 = vmul.f32 %v157_v26, %v157_v26  ;;  %v158_v31 = vadd.f32 %v157_v26, %v156_v22 }
  0xe3   :  { %89 = vadd.xlane.f32.xlu0 %v88_v29  ;;  %v94_v32 = vadd.f32 %v93_v28, %v92_v25 }
  0xe4   :  { %159 = vadd.xlane.f32.xlu1 %v158_v31  ;;  %v164_v33 = vadd.f32 %v163_v30, %v162_v27 }
  0xe8   :  { %95 = vadd.xlane.f32.xlu1 %v94_v32 }
  0xec   :  { %165 = vadd.xlane.f32.xlu1 %v164_v33 }
 0x170   :  { %v90_v34 = vpop.xlane.xlu0 %89 }
 0x171   :  { %v160_v35 = vpop.xlane.xlu1 %159 }
 0x172   :  { %v161_v36 = vadd.f32 %v160_v35, %v90_v34 }
 0x174   :  { %169 = vst.msk [vmem:[%s239_s3] sm:$0xff] %vm168_vm2, %v161_v36 }
 0x175   :  { %v96_v37 = vpop.xlane.xlu1 %95 }
 0x179   :  { %v166_v38 = vpop.xlane.xlu1 %165 }
 0x17a   :  { %v167_v39 = vadd.f32 %v166_v38, %v96_v37 }
 0x17c   :  { %170 = vst.msk [vmem:[%s240_s4] sm:$0xff] %vm168_vm2, %v167_v39 }

</bundles_post_ra>
